<compile_context>
chip_gen: v5e
topology: v5e:2x2
jax: 0.10.0
libtpu: 0.0.40
codegen_flags: <defaults>
</compile_context>

<pallas_src>
import math
from functools import partial

import jax
import jax.numpy as jnp
from jax.experimental import pallas as pl
from jax.experimental.pallas import tpu as pltpu


# ----------------------------- helpers --------------------------------------
def _round_up(v, m):
    return ((v + m - 1) // m) * m


def _sublane_multiple(dtype):
    itemsize = jnp.dtype(dtype).itemsize
    if itemsize >= 4:
        return 8
    if itemsize == 2:
        return 16
    return 32


def _vmem_capacity_bytes():
    try:
        return int(pltpu.get_tpu_info().vmem_capacity_bytes)
    except Exception:
        return 64 * 1024 * 1024  # conservative: v7x per-TensorCore VMEM


def _default_tiles(vmem_cap):
    # Generation-gated: 128 MiB-VMEM chips (v5e/v6e) take larger output tiles;
    # 64 MiB (v7x / unknown) stays at ~10-12 MiB double-buffered working set.
    if vmem_cap >= 100 * 1024 * 1024:
        return 1024, 1024, 512  # tm, tn, tk
    return 512, 1024, 512


# ----------------------------- kernel ---------------------------------------
def _make_linear_kernel(has_bias: bool, use_scratch: bool):
    """Kernel for one (tm, tn) output tile of x @ W_t + b with K-reduction grid.

    x_ref : (tm, tk)          activations tile
    w_ref : (tk, tn)          weight tile, pre-transposed [in, out]
    b_ref : (1, tn) f32       bias tile (only if has_bias)
    o_ref : (tm, tn)          output tile (doubles as f32 accumulator if
                              use_scratch is False)
    acc_ref:(tm, tn) f32      scratch accumulator (only if use_scratch)
    """

    def kernel(*refs):
        if use_scratch:
            if has_bias:
                x_ref, w_ref, b_ref, o_ref, acc_ref = refs
            else:
                x_ref, w_ref, o_ref, acc_ref = refs
        else:
            if has_bias:
                x_ref, w_ref, b_ref, o_ref = refs
            else:
                x_ref, w_ref, o_ref = refs
            acc_ref = o_ref  # f32 output block is the accumulator

        k = pl.program_id(2)

        @pl.when(k == 0)
        def _():
            acc_ref[...] = jnp.zeros_like(acc_ref)

        acc_ref[...] += jnp.dot(
            x_ref[...], w_ref[...], preferred_element_type=jnp.float32
        )

        if use_scratch or has_bias:
            @pl.when(k == pl.num_programs(2) - 1)
            def _():
                if use_scratch:
                    res = acc_ref[...]
                    if has_bias:
                        res = res + b_ref[...]
                    o_ref[...] = res.astype(o_ref.dtype)
                else:
                    o_ref[...] = o_ref[...] + b_ref[...]

    return kernel


# ------------------------- parameter preparation ----------------------------
def prepare_linear_params(weight, bias=None, *, compute_dtype=None,
                          tn=None, tk=None, vmem_cap=None):
    """One-off prep of the static parameters: transpose W to [in, out], cast,
    and zero-pad to tile multiples so there is no per-call padding pass."""
    out_ch, in_ch = weight.shape
    if compute_dtype is None:
        compute_dtype = weight.dtype
    compute_dtype = jnp.dtype(compute_dtype)
    if vmem_cap is None:
        vmem_cap = _vmem_capacity_bytes()
    _, tn_d, tk_d = _default_tiles(vmem_cap)
    if tn is None:
        tn = min(tn_d, _round_up(out_ch, 128))
    if tk is None:
        tk = min(tk_d, _round_up(in_ch, 128))
    Np = _round_up(out_ch, tn)
    Kp = _round_up(in_ch, tk)

    w_t = jnp.transpose(weight).astype(compute_dtype)  # [in, out]
    if (Kp, Np) != (in_ch, out_ch):
        w_t = jnp.zeros((Kp, Np), compute_dtype).at[:in_ch, :out_ch].set(w_t)

    b_p = None
    if bias is not None:
        b_p = jnp.zeros((1, Np), jnp.float32).at[0, :out_ch].set(
            bias.astype(jnp.float32))

    return dict(w=w_t, b=b_p, tn=tn, tk=tk,
                in_channels=in_ch, out_channels=out_ch,
                compute_dtype=compute_dtype, vmem_cap=vmem_cap)


# ------------------------------ wrapper --------------------------------------
_SMALL_FALLBACK_ELEMS = 1 << 16   # M*K*N below this -> plain XLA matmul


def pallas_linear(x, weight=None, bias=None, *, prepared=None,
                  compute_dtype=None, tm=None, allow_fallback=True):
    """x: [..., in_channels] -> [..., out_channels] = x @ W.T + b."""
    if prepared is None:
        if weight is None:
            raise ValueError("either `weight` or `prepared` must be given")
        prepared = prepare_linear_params(weight, bias, compute_dtype=compute_dtype)

    in_ch = prepared["in_channels"]
    out_ch = prepared["out_channels"]
    comp_dt = prepared["compute_dtype"]

    orig_shape = x.shape
    out_dtype = x.dtype
    x2d = x.reshape(-1, in_ch)
    M = x2d.shape[0]

    # Tiny problems: pallas_call fixed overhead + padding dominates.
    if allow_fallback and (M * in_ch * out_ch < _SMALL_FALLBACK_ELEMS):
        w_t = prepared["w"][:in_ch, :out_ch]
        y = jnp.dot(x2d.astype(comp_dt), w_t, preferred_element_type=jnp.float32)
        if prepared["b"] is not None:
            y = y + prepared["b"][0, :out_ch]
        return y.astype(out_dtype).reshape(*orig_shape[:-1], out_ch)

    w_p = prepared["w"]
    b_p = prepared["b"]
    tn = prepared["tn"]
    tk = prepared["tk"]
    Kp, Np = w_p.shape
    vmem_cap = prepared["vmem_cap"]

    sub_m = _sublane_multiple(comp_dt)
    if tm is None:
        tm = _default_tiles(vmem_cap)[0]
    tm = min(tm, _round_up(max(M, 1), sub_m))
    tm = _round_up(max(tm, sub_m), sub_m)

    # v7x megacore: make sure the ("parallel","parallel") (i, j) grid has >= 2
    # blocks so both TensorCores get work. Halved tiles still divide Np / keep
    # sublane alignment.
    def _grid_ij(tm_, tn_):
        return (_round_up(M, tm_) // tm_) * (Np // tn_)

    for _ in range(8):
        if _grid_ij(tm, tn) >= 2:
            break
        if tn >= 256 and (tn // 2) % 128 == 0:
            tn //= 2
        elif tm >= 2 * sub_m and (tm // 2) % sub_m == 0:
            tm //= 2
        else:
            break

    Mp = _round_up(M, tm)

    # Pad x only when required (K-padding is needed for the zero-extended
    # reduction; M-padding only when tm does not divide M).
    x2d = x2d.astype(comp_dt)
    if (Mp, Kp) != (M, in_ch):
        x_p = jnp.zeros((Mp, Kp), comp_dt).at[:M, :in_ch].set(x2d)
    else:
        x_p = x2d

    has_bias = b_p is not None
    use_scratch = out_dtype != jnp.float32   # f32 out -> accumulate in o_ref

    grid = (Mp // tm, Np // tn, Kp // tk)

    in_specs = [
        pl.BlockSpec((tm, tk), lambda i, j, k: (i, k)),   # x tile
        pl.BlockSpec((tk, tn), lambda i, j, k: (k, j)),   # W^T tile [in, out]
    ]
    inputs = [x_p, w_p]
    if has_bias:
        in_specs.append(pl.BlockSpec((1, tn), lambda i, j, k: (0, j)))
        inputs.append(b_p)

    scratch_shapes = [pltpu.VMEM((tm, tn), jnp.float32)] if use_scratch else []

    # VMEM budget derived from the actual working set; never the full physical
    # VMEM (v7x only has 64 MiB per TensorCore).
    in_item = jnp.dtype(comp_dt).itemsize
    out_item = jnp.dtype(out_dtype).itemsize
    work = 2 * (tm * tk + tk * tn) * in_item + 2 * tm * tn * out_item
    if use_scratch:
        work += tm * tn * 4
    if has_bias:
        work += 2 * tn * 4
    vmem_limit = int(min(0.75 * vmem_cap,
                         max(work * 3 // 2 + (4 << 20), 32 << 20)))
    vmem_limit = max(vmem_limit, work + (2 << 20))

    out_p = pl.pallas_call(
        _make_linear_kernel(has_bias, use_scratch),
        out_shape=jax.ShapeDtypeStruct((Mp, Np), out_dtype),
        grid_spec=pltpu.PrefetchScalarGridSpec(
            num_scalar_prefetch=0,
            grid=grid,
            in_specs=in_specs,
            out_specs=pl.BlockSpec((tm, tn), lambda i, j, k: (i, j)),
            scratch_shapes=scratch_shapes,
        ),
        compiler_params=pltpu.CompilerParams(
            dimension_semantics=("parallel", "parallel", "arbitrary"),
            vmem_limit_bytes=vmem_limit,
        ),
    )(*inputs)

    out = out_p
    if (Mp, Np) != (M, out_ch):
        out = out[:M, :out_ch]
    return out.reshape(*orig_shape[:-1], out_ch)


def glorot_init(key, out_ch, in_ch, dtype=jnp.float32):
    # glorot uniform: U(-a, a), a = sqrt(6 / (fan_in + fan_out))
    a = math.sqrt(6.0 / (in_ch + out_ch))
    return jax.random.uniform(key, (out_ch, in_ch), dtype, minval=-a, maxval=a)


# ------------------------------- demo ----------------------------------------
if __name__ == "__main__":
    key = jax.random.PRNGKey(0)
    k_x, k_w, k_x2, k_w2 = jax.random.split(key, 4)

    # GNN-style linear: x is [..., in_channels]; exercises the Pallas path.
    in_channels, out_channels = 192, 256
    x = jax.random.normal(k_x, (4, 64, in_channels), jnp.float32)
    weight = glorot_init(k_w, out_channels, in_channels)   # [out, in], glorot
    bias = jnp.zeros((out_channels,), jnp.float32)         # zeros init

    prep = prepare_linear_params(weight, bias)              # one-off (static params)
    y = pallas_linear(x, prepared=prep)
    jax.block_until_ready(y)
    y_ref = x @ weight.T + bias
    assert y.shape == (4, 64, out_channels)
    assert jnp.allclose(y, y_ref, atol=2e-3, rtol=2e-3)

    # No-bias variant: skips the bias DMA / add entirely.
    prep_nb = prepare_linear_params(weight, None)
    y_nb = pallas_linear(x, prepared=prep_nb)
    jax.block_until_ready(y_nb)
    assert jnp.allclose(y_nb, x @ weight.T, atol=2e-3, rtol=2e-3)

    # Tiny problem (typical toy module size) -> small-problem fallback path.
    x_s = jax.random.normal(k_x2, (8, 32), jnp.float32)
    w_s = glorot_init(k_w2, 64, 32)
    b_s = jnp.zeros((64,), jnp.float32)
    y_s = pallas_linear(x_s, w_s, b_s)
    jax.block_until_ready(y_s)
    assert jnp.allclose(y_s, x_s @ w_s.T + b_s, atol=1e-4, rtol=1e-4)

    print("KERNEL_OK")
</pallas_src>

<mosaic_0001>
module attributes {stable_mosaic.version = 11 : i64} {
  func.func @kernel(%arg0: i32, %arg1: i32, %arg2: i32, %arg3: memref<256x256xf32, #tpu.memory_space<vmem>>, %arg4: memref<256x128xf32, #tpu.memory_space<vmem>>, %arg5: memref<1x128xf32, #tpu.memory_space<vmem>>, %arg6: memref<256x128xf32, #tpu.memory_space<vmem>>) attributes {dimension_semantics = [#tpu.dimension_semantics<parallel>, #tpu.dimension_semantics<parallel>, #tpu.dimension_semantics<arbitrary>], iteration_bounds = array<i64: 1, 2, 1>, scalar_prefetch = 0 : i64, scratch_operands = 0 : i64, tpu.core_type = #tpu.core_type<tc>, window_params = [{transform_indices = @transform_0, window_bounds = array<i64: 256, 256>}, {transform_indices = @transform_1, window_bounds = array<i64: 256, 128>}, {transform_indices = @transform_2, window_bounds = array<i64: 1, 128>}, {transform_indices = @transform_3, window_bounds = array<i64: 256, 128>}]} {
    %c0_i32 = arith.constant 0 : i32
    %0 = arith.cmpi eq, %arg2, %c0_i32 : i32
    %1 = arith.extui %0 : i1 to i32
    %c0_i32_0 = arith.constant 0 : i32
    %2 = arith.cmpi ne, %1, %c0_i32_0 : i32
    scf.if %2 {
      %cst_10 = arith.constant 0.000000e+00 : f32
      %12 = vector.broadcast %cst_10 : f32 to vector<256x128xf32>
      %c0_11 = arith.constant 0 : index
      %c0_12 = arith.constant 0 : index
      %13 = vector.load %arg6[%c0_11, %c0_12] : memref<256x128xf32, #tpu.memory_space<vmem>>, vector<256x128xf32>
      tpu.vector_store %arg6[%c0_11, %c0_12], %12 {strides = array<i32>} : memref<256x128xf32, #tpu.memory_space<vmem>>, vector<256x128xf32>,
    } else {
    }
    %c0 = arith.constant 0 : index
    %c0_1 = arith.constant 0 : index
    %3 = vector.load %arg6[%c0, %c0_1] : memref<256x128xf32, #tpu.memory_space<vmem>>, vector<256x128xf32>
    %c0_2 = arith.constant 0 : index
    %c0_3 = arith.constant 0 : index
    %4 = vector.load %arg3[%c0_2, %c0_3] : memref<256x256xf32, #tpu.memory_space<vmem>>, vector<256x256xf32>
    %c0_4 = arith.constant 0 : index
    %c0_5 = arith.constant 0 : index
    %5 = vector.load %arg4[%c0_4, %c0_5] : memref<256x128xf32, #tpu.memory_space<vmem>>, vector<256x128xf32>
    %cst = arith.constant dense<0.000000e+00> : vector<256x128xf32>
    %6 = tpu.matmul %4, %5, %cst {dimension_numbers = #tpu.dot_dimension_numbers<[1], [0], [0], [1], [0, 0, 1, 1], [], []>} : vector<256x256xf32>, vector<256x128xf32>, vector<256x128xf32> -> vector<256x128xf32>
    %7 = arith.addf %3, %6 : vector<256x128xf32>
    %c0_6 = arith.constant 0 : index
    %c0_7 = arith.constant 0 : index
    %8 = vector.load %arg6[%c0_6, %c0_7] : memref<256x128xf32, #tpu.memory_space<vmem>>, vector<256x128xf32>
    tpu.vector_store %arg6[%c0_6, %c0_7], %7 {strides = array<i32>} : memref<256x128xf32, #tpu.memory_space<vmem>>, vector<256x128xf32>,
    %c0_i32_8 = arith.constant 0 : i32
    %9 = arith.cmpi eq, %arg2, %c0_i32_8 : i32
    %10 = arith.extui %9 : i1 to i32
    %c0_i32_9 = arith.constant 0 : i32
    %11 = arith.cmpi ne, %10, %c0_i32_9 : i32
    scf.if %11 {
      %c0_10 = arith.constant 0 : index
      %c0_11 = arith.constant 0 : index
      %12 = vector.load %arg6[%c0_10, %c0_11] : memref<256x128xf32, #tpu.memory_space<vmem>>, vector<256x128xf32>
      %c0_12 = arith.constant 0 : index
      %c0_13 = arith.constant 0 : index
      %13 = vector.load %arg5[%c0_12, %c0_13] : memref<1x128xf32, #tpu.memory_space<vmem>>, vector<1x128xf32>
      %14 = vector.broadcast %13 : vector<1x128xf32> to vector<256x128xf32>
      %15 = arith.addf %12, %14 : vector<256x128xf32>
      %c0_14 = arith.constant 0 : index
      %c0_15 = arith.constant 0 : index
      %16 = vector.load %arg6[%c0_14, %c0_15] : memref<256x128xf32, #tpu.memory_space<vmem>>, vector<256x128xf32>
      tpu.vector_store %arg6[%c0_14, %c0_15], %15 {strides = array<i32>} : memref<256x128xf32, #tpu.memory_space<vmem>>, vector<256x128xf32>,
    } else {
    }
    return
  }
  func.func @transform_0(%arg0: i32, %arg1: i32, %arg2: i32) -> (i32, i32) {
    %c0_i32 = arith.constant 0 : i32
    return %arg0, %arg2 : i32, i32
  }
  func.func @transform_1(%arg0: i32, %arg1: i32, %arg2: i32) -> (i32, i32) {
    %c0_i32 = arith.constant 0 : i32
    return %arg2, %arg1 : i32, i32
  }
  func.func @transform_2(%arg0: i32, %arg1: i32, %arg2: i32) -> (i32, i32) {
    %c0_i32 = arith.constant 0 : i32
    %c0_i32_0 = arith.constant 0 : i32
    return %c0_i32, %arg1 : i32, i32
  }
  func.func @transform_3(%arg0: i32, %arg1: i32, %arg2: i32) -> (i32, i32) {
    %c0_i32 = arith.constant 0 : i32
    return %arg0, %arg1 : i32, i32
  }
}

</mosaic_0001>

<bundles_post_ra>
// kernel: tpu_custom_call.1
= control target key start
LH: loop header
LB: loop body
LE: loop exit
PB: predicated region body
PF: predicated region fallthrough
CT: control target
= control target key end

     0   :  { %8 = vsyncpa [#allocation3], 0  ;;  %s1603_s0 = inlined_call_operand.hbm [shape: f32[256,256], index: 0, kind: input, shape index: {}]   ;;  %s1604_s1 = inlined_call_operand.hbm [shape: f32[256,256], index: 1, kind: input, shape index: {}]   ;;  %s1605_s2 = inlined_call_operand.hbm [shape: f32[1,256], index: 2, kind: input, shape index: {}]   ;;  %s1606_s3 = inlined_call_operand.hbm [shape: f32[256,256], index: 3, kind: output, shape index: {}]  }
   0x1   :  { %9 = vsyncpa [#allocation6], 0 }
   0x2   :  { %11 = vsyncpa [#allocation6 + $0x1], 0 }
   0x3   :  { %12 = vsyncpa [#allocation4], 0 }
   0x4   :  { %14 = vsyncpa [#allocation4 + $0x1], 0  ;;  %s1318_s12 = smov 0   ;;  %s1320_s13 = smov 0  }
   0x5   :  { %s1322_s14 = smov 0   ;;  %s1324_s15 = smov 0  }
   0x6   :  { %s1326_s16 = smov 0   ;;  %s1328_s17 = smov 0  }
   0x7 LB: > { %s35_s18 = sadd.s32 1, %s1284_s16  ;;  %s76_s19 = sadd.s32 1, %s1276_s14  ;;  %s1288_s17 = sphi %s1328_s17, %s20_s17   ;;  %s1284_s16 = sphi %s1326_s16, %s1617_s16   ;;  %s1280_s15 = sphi %s1324_s15, %s1616_s15   ;;  %s1276_s14 = sphi %s1322_s14, %s1615_s14   ;;  %s1272_s13 = sphi %s1320_s13, %s1614_s13   ;;  %s1268_s12 = sphi %s1318_s12, %s1613_s12  }
   0x8   : > { %p37_p0 = scmp.ge.s32.totalorder %s35_s18, 2  ;;  %p83_p1 = scmp.ne.s32.totalorder %s1276_s14, %s1272_s13 }
   0x9   : > { %p84_p2 = scmp.eq.s32.totalorder %s1288_s17, 0  ;;  %p982_p4 = scmp.ge.s32.totalorder %s1288_s17, 2 }
   0xa   : > { %s1619_s18 = smov (%p37_p0, %s35_s18), 0  ;;  %p1051_p5 = scmp.lt.s32.totalorder %s1288_s17, 2 }
   0xb   : > { %p1358_p3 = por %p84_p2, %p83_p1  ;;  %s72_s21 = ssub.s32 %s1284_s16, %s1619_s18 }
   0xc   : > { %p74_p6 = scmp.eq.s32.totalorder %s72_s21, 0  ;;  %s187_s22 = sand.u32 1, %s1288_s17  }
   0xd   : > { %s189_s23 = sand.u32 1, %s1276_s14   ;;  %s984_s26 = sshll.u32 %s1284_s16, 3 }
   0xe   : > { %s1369_s24 = scalar_select %p74_p6, %s1276_s14, %s76_s19  }
   0xf   : > { %s983_s25 = sshll.u32 %s189_s23, 8  ;;  %s198_s29 = scalar_lea.hbm %s1604_s1, %s984_s26 }
  0x10   : > { %s199_s30 = sshll.u32 %s198_s29, 4  ;;  %s191_s4 = scalar_lea.vmem [#allocation5], %s983_s25  ;;  %s200_s30 = int_to_ptr.hbm [resolvable:$true] %s199_s30 }
  0x11   : > { %s201_s5 = sshll.u32 %s191_s4, 4  ;;  %p1381_p7 = pnand %p1051_p5, %p1358_p3  ;;  %s202_s5 = int_to_ptr.vmem [resolvable:$true] %s201_s5 }
  0x12   : > { %s1385_s7 = scalar_lea.sflag [#allocation6], %s187_s22  ;;  %s1290_s8 = smov 256  }
  0x13   : > { %s1291_s9 = smov 128   ;;  %s1292_s10 = smov 8  }
  0x14   : > { %1042 = dma.hbm_to_vmem [thread:$0]  (!%p1381_p7), %s200_s30, 4096, %s202_s5, %s1385_s7, %s1290_s8, %s1291_s9, %s1292_s10  }
  0x15   : > { %s1392_s11 = sadd.s32 4294967295, %s1288_s17   ;;  %s979_s19 = sadd.s32 4294967294, %s1288_s17  }
  0x16   : > { %p89_p8 = scmp.ne.s32.totalorder %s1272_s13, %s1268_s12  ;;  %p90_p9 = scmp.eq.s32.totalorder %s1392_s11, 0 }
  0x17   : > { %p141_p10 = scmp.eq.s32.totalorder %s1392_s11, 1  ;;  %p147_p11 = scmp.eq.s32.totalorder %s979_s19, 1 }
  0x18   : > { %p1401_p12 = por %p90_p9, %p89_p8  ;;  %p980_p13 = scmp.ge.s32.totalorder %s1288_s17, 1 }
  0x19   : > { %p1409_p0 = por %p141_p10, %p83_p1  ;;  %p1413_p2 = por %p147_p11, %p89_p8 }
  0x1a   : > { %p154_p3 = scmp.lt.s32.totalorder %s1288_s17, 3  ;;  %s171_s27 = sshll.u32 %s1603_s0, 4  ;;  %s172_s27 = int_to_ptr.hbm [resolvable:$true] %s171_s27 }
  0x1b   : > { %s1293_s29 = smov [#allocation2]   ;;  %s217_s9 = scalar_lea.hbm %s1605_s2, %s1284_s16 }
  0x1c   : > { %p1421_p5 = pnand %p980_p13, %p154_p3  ;;  %s173_s30 = sshll.u32 %s1293_s29, 4  ;;  %s174_s30 = int_to_ptr.vmem [resolvable:$true] %s173_s30 }
  0x1d   : > { %s219_s10 = sshll.u32 %s217_s9, 4  ;;  %s214_s19 = scalar_lea.vmem [#allocation7], %s189_s23  ;;  %s220_s10 = int_to_ptr.hbm [resolvable:$true] %s219_s10 }
  0x1e   : > { %p1035_p1 = pneg %p1421_p5  ;;  %s221_s25 = sshll.u32 %s214_s19, 4  ;;  %s222_s25 = int_to_ptr.vmem [resolvable:$true] %s221_s25 }
  0x1f   : > { %s1294_s26 = smov 16   ;;  %230 = sbr.rel (%p1421_p5) target bundleno = 335 (0x14f), region = 32 }
  0x20   : > { %p1036_p6 = pnand %p1035_p1, %p90_p9 }
  0x21   : > { %1045 = dma.hbm_to_vmem [thread:$0]  (!%p1381_p7), %s220_s10, 16, %s222_s25, %s1385_s7  }
  0x22   : > { %1038 = dma.hbm_to_vmem [thread:$0]  (!%p1036_p6), %s172_s27, 8192, %s174_s30, [#allocation3], %s1290_s8, %s1290_s8, %s1294_s26  }
  0x24   : > { %1255 = dma.done.wait (%p90_p9), [#allocation3], 8192  }
  0x25   : > { %1257 = vsyncadd (%p90_p9), [#allocation3], 4294959104  ;;  %s237_s23 = sand.u32 1, %s1392_s11   ;;  %s1448_s29 = sand.u32 1, %s1272_s13  }
  0x26   : > { %s987_s8 = sshll.u32 %s1448_s29, 8  ;;  %s238_s6 = scalar_lea.sflag [#allocation6], %s237_s23 }
  0x27   : > { %s1453_s7 = scalar_lea.vmem [#allocation5], %s987_s8 }
  0x28   : > { %1259 = dma.done.wait (%p1401_p12), %s238_s6, 4112  }
  0x29   : > { %1261 = vsyncadd (%p1401_p12), %s238_s6, 4294963184  ;;  %v429_v0 = vld [vmem:[%s1453_s7 + $0x78] sm:$0xff]  ;;  %v428_v2 = vld [vmem:[%s1453_s7 + $0x70] sm:$0xff]  ;;  %s250_s11 = scalar_lea.vmem [#allocation7], %s1448_s29  ;;  %s1499_s20 = scalar_lea.vmem [#allocation8], %s987_s8 }
  0x2a   : > { %v445_v1 = vld [vmem:[%s1453_s7 + $0xf8] sm:$0xff]  ;;  %993 = vmatpush.msra.mxu2 %v429_v0  ;;  %v444_v3 = vld [vmem:[%s1453_s7 + $0xf0] sm:$0xff]  ;;  %v427_v4 = vld [vmem:[%s1453_s7 + $0x68] sm:$0xff]  ;;  %446 = vmatpush.msra.mxu0 %v429_v0  ;;  %s990_s27 = sshll.u32 %s1280_s15, 3  ;;  %s854_s5 = sshll.u32 %s1499_s20, 4  ;;  %s855_s5 = int_to_ptr.vmem [resolvable:$true] %s854_s5 }
  0x2b   : > { %1009 = vmatpush.msra.mxu3 %v445_v1  ;;  %v443_v5 = vld [vmem:[%s1453_s7 + $0xe8] sm:$0xff]  ;;  %559 = vmatpush.msra.mxu1 %v445_v1  ;;  %v426_v6 = vld [vmem:[%s1453_s7 + $0x60] sm:$0xff]  ;;  %v425_v8 = vld [vmem:[%s1453_s7 + $0x58] sm:$0xff]  ;;  %s853_s4 = scalar_lea.hbm %s1606_s3, %s990_s27  ;;  %s840_s9 = scalar_lea.sflag [#allocation4], %s1448_s29 }
  0x2c   : > { %994 = vmatpush.msra.mxu2 %v428_v2  ;;  %v442_v7 = vld [vmem:[%s1453_s7 + $0xe0] sm:$0xff]  ;;  %447 = vmatpush.msra.mxu0 %v428_v2  ;;  %v441_v9 = vld [vmem:[%s1453_s7 + $0xd8] sm:$0xff]  ;;  %v424_v10 = vld [vmem:[%s1453_s7 + $0x50] sm:$0xff]  ;;  %s856_s15 = sshll.u32 %s853_s4, 4  ;;  %s1222_s23 = scalar_lea.hbm %s1606_s3, 512  ;;  %s857_s15 = int_to_ptr.hbm [resolvable:$true] %s856_s15 }
  0x2d   : > { %1010 = vmatpush.msra.mxu3 %v444_v3  ;;  %560 = vmatpush.msra.mxu1 %v444_v3  ;;  %v440_v11 = vld [vmem:[%s1453_s7 + $0xd0] sm:$0xff]  ;;  %v423_v12 = vld [vmem:[%s1453_s7 + $0x48] sm:$0xff]  ;;  %v422_v14 = vld [vmem:[%s1453_s7 + $0x40] sm:$0xff]  ;;  %s1216_s10 = sshra.s32 %s857_s15, 4  ;;  %s1217_s10 = int_to_ptr.hbm [resolvable:$true] %s1216_s10 }
  0x2e   : > { %995 = vmatpush.msra.mxu2 %v427_v4  ;;  %448 = vmatpush.msra.mxu0 %v427_v4  ;;  %v439_v13 = vld [vmem:[%s1453_s7 + $0xc8] sm:$0xff]  ;;  %v438_v15 = vld [vmem:[%s1453_s7 + $0xc0] sm:$0xff]  ;;  %v421_v16 = vld [vmem:[%s1453_s7 + $0x38] sm:$0xff]  ;;  %s1218_s19 = scalar_lea.hbm %s1217_s10, 256  ;;  %p1223_p10 = scmp.lt.s32.totalorder %s1217_s10, %s1606_s3 }
  0x2f   : > { %1011 = vmatpush.msra.mxu3 %v443_v5  ;;  %561 = vmatpush.msra.mxu1 %v443_v5  ;;  %v437_v17 = vld [vmem:[%s1453_s7 + $0xb8] sm:$0xff]  ;;  %v420_v18 = vld [vmem:[%s1453_s7 + $0x30] sm:$0xff]  ;;  %v419_v20 = vld [vmem:[%s1453_s7 + $0x28] sm:$0xff]  ;;  %p1219_p7 = scmp.ne.s32.totalorder %s1217_s10, %s1218_s19  ;;  %p1224_p11 = scmp.lt.s32.totalorder %s1222_s23, %s1218_s19 }
  0x30   : > { %996 = vmatpush.msra.mxu2 %v426_v6  ;;  %449 = vmatpush.msra.mxu0 %v426_v6  ;;  %v436_v19 = vld [vmem:[%s1453_s7 + $0xb0] sm:$0xff]  ;;  %v435_v21 = vld [vmem:[%s1453_s7 + $0xa8] sm:$0xff]  ;;  %v418_v22 = vld [vmem:[%s1453_s7 + $0x20] sm:$0xff] }
  0x31   : > { %1012 = vmatpush.msra.mxu3 %v442_v7  ;;  %562 = vmatpush.msra.mxu1 %v442_v7  ;;  %v434_v23 = vld [vmem:[%s1453_s7 + $0xa0] sm:$0xff]  ;;  %v417_v24 = vld [vmem:[%s1453_s7 + $0x18] sm:$0xff]  ;;  %v416_v26 = vld [vmem:[%s1453_s7 + $0x10] sm:$0xff]  ;;  %p1220_p8 = pnand %p1219_p7, %p1409_p0  ;;  %p1225_p12 = por %p1224_p11, %p1223_p10 }
  0x32   : > { %997 = vmatpush.msra.mxu2 %v425_v8  ;;  %450 = vmatpush.msra.mxu0 %v425_v8  ;;  %v433_v25 = vld [vmem:[%s1453_s7 + $0x98] sm:$0xff]  ;;  %v432_v27 = vld [vmem:[%s1453_s7 + $0x90] sm:$0xff]  ;;  %v415_v28 = vld [vmem:[%s1453_s7 + $0x8] sm:$0xff] }
  0x33   : > { %1013 = vmatpush.msra.mxu3 %v441_v9  ;;  %563 = vmatpush.msra.mxu1 %v441_v9  ;;  %v431_v29 = vld [vmem:[%s1453_s7 + $0x88] sm:$0xff]  ;;  %v414_v30 = vld [vmem:[%s1453_s7] sm:$0xff]  ;;  %v384_v36 = vld [vmem:[#allocation2 + $0x110] sm:$0xff]  ;;  %p1221_p9 = pneg %p1220_p8 }
  0x34   : > { %998 = vmatpush.msra.mxu2 %v424_v10  ;;  %451 = vmatpush.msra.mxu0 %v424_v10  ;;  %v430_v31 = vld [vmem:[%s1453_s7 + $0x80] sm:$0xff]  ;;  %v383_v33 = vld [vmem:[#allocation2 + $0x108] sm:$0xff]  ;;  %v385_v37 = vld [vmem:[#allocation2 + $0x118] sm:$0xff] }
  0x35   : > { %1014 = vmatpush.msra.mxu3 %v440_v11  ;;  %564 = vmatpush.msra.mxu1 %v440_v11  ;;  %v382_v32 = vld [vmem:[#allocation2 + $0x100] sm:$0xff]  ;;  %v351_v35 = vld [vmem:[#allocation2 + $0x8] sm:$0xff]  ;;  %v352_v38 = vld [vmem:[#allocation2 + $0x10] sm:$0xff]  ;;  %p1226_p13 = pnand %p1225_p12, %p1221_p9 }
  0x36   : > { %999 = vmatpush.msra.mxu2 %v423_v12  ;;  %452 = vmatpush.msra.mxu0 %v423_v12  ;;  %v350_v34 = vld [vmem:[#allocation2] sm:$0xff]  ;;  %v353_v39 = vld [vmem:[#allocation2 + $0x18] sm:$0xff]  ;;  %v387_v41 = vld [vmem:[#allocation2 + $0x128] sm:$0xff] }
  0x37   : > { %1015 = vmatpush.msra.mxu3 %v439_v13  ;;  %565 = vmatpush.msra.mxu1 %v439_v13  ;;  %v386_v40 = vld [vmem:[#allocation2 + $0x120] sm:$0xff]  ;;  %v355_v43 = vld [vmem:[#allocation2 + $0x28] sm:$0xff]  ;;  %v388_v44 = vld [vmem:[#allocation2 + $0x130] sm:$0xff] }
  0x38   : > { %1000 = vmatpush.msra.mxu2 %v422_v14  ;;  %453 = vmatpush.msra.mxu0 %v422_v14  ;;  %v354_v42 = vld [vmem:[#allocation2 + $0x20] sm:$0xff]  ;;  %v389_v45 = vld [vmem:[#allocation2 + $0x138] sm:$0xff]  ;;  %v356_v46 = vld [vmem:[#allocation2 + $0x30] sm:$0xff] }
  0x39   : > { %1016 = vmatpush.msra.mxu3 %v438_v15  ;;  %566 = vmatpush.msra.mxu1 %v438_v15  ;;  %v357_v47 = vld [vmem:[#allocation2 + $0x38] sm:$0xff]  ;;  %v390_v48 = vld [vmem:[#allocation2 + $0x140] sm:$0xff]  ;;  %v391_v49 = vld [vmem:[#allocation2 + $0x148] sm:$0xff] }
  0x3a   : > { %1001 = vmatpush.msra.mxu2 %v421_v16  ;;  %454 = vmatpush.msra.mxu0 %v421_v16  ;;  %v358_v50 = vld [vmem:[#allocation2 + $0x40] sm:$0xff]  ;;  %v359_v51 = vld [vmem:[#allocation2 + $0x48] sm:$0xff]  ;;  %v392_v52 = vld [vmem:[#allocation2 + $0x150] sm:$0xff] }
  0x3b   : > { %1017 = vmatpush.msra.mxu3 %v437_v17  ;;  %567 = vmatpush.msra.mxu1 %v437_v17  ;;  %v393_v53 = vld [vmem:[#allocation2 + $0x158] sm:$0xff]  ;;  %v360_v54 = vld [vmem:[#allocation2 + $0x50] sm:$0xff]  ;;  %v394_v56 = vld [vmem:[#allocation2 + $0x160] sm:$0xff] }
  0x3c   : > { %1002 = vmatpush.msra.mxu2 %v420_v18  ;;  %455 = vmatpush.msra.mxu0 %v420_v18  ;;  %v361_v55 = vld [vmem:[#allocation2 + $0x58] sm:$0xff]  ;;  %v395_v57 = vld [vmem:[#allocation2 + $0x168] sm:$0xff]  ;;  %v362_v58 = vld [vmem:[#allocation2 + $0x60] sm:$0xff] }
  0x3d   : > { %1018 = vmatpush.msra.mxu3 %v436_v19  ;;  %568 = vmatpush.msra.mxu1 %v436_v19  ;;  %v363_v59 = vld [vmem:[#allocation2 + $0x68] sm:$0xff]  ;;  %v396_v60 = vld [vmem:[#allocation2 + $0x170] sm:$0xff]  ;;  %v397_v61 = vld [vmem:[#allocation2 + $0x178] sm:$0xff] }
  0x3e   : > { %1003 = vmatpush.msra.mxu2 %v419_v20  ;;  %456 = vmatpush.msra.mxu0 %v419_v20  ;;  %v364_v62 = vld [vmem:[#allocation2 + $0x70] sm:$0xff]  ;;  %v365_v63 = vld [vmem:[#allocation2 + $0x78] sm:$0xff]  ;;  %v398_v0 = vld [vmem:[#allocation2 + $0x180] sm:$0xff] }
  0x3f   : > { %1019 = vmatpush.msra.mxu3 %v435_v21  ;;  %569 = vmatpush.msra.mxu1 %v435_v21  ;;  %v399_v1 = vld [vmem:[#allocation2 + $0x188] sm:$0xff]  ;;  %v366_v2 = vld [vmem:[#allocation2 + $0x80] sm:$0xff]  ;;  %v400_v4 = vld [vmem:[#allocation2 + $0x190] sm:$0xff] }
  0x40   : > { %1004 = vmatpush.msra.mxu2 %v418_v22  ;;  %457 = vmatpush.msra.mxu0 %v418_v22  ;;  %v367_v3 = vld [vmem:[#allocation2 + $0x88] sm:$0xff]  ;;  %v401_v5 = vld [vmem:[#allocation2 + $0x198] sm:$0xff]  ;;  %v368_v6 = vld [vmem:[#allocation2 + $0x90] sm:$0xff] }
  0x41   : > { %1020 = vmatpush.msra.mxu3 %v434_v23  ;;  %570 = vmatpush.msra.mxu1 %v434_v23  ;;  %v369_v7 = vld [vmem:[#allocation2 + $0x98] sm:$0xff]  ;;  %v402_v8 = vld [vmem:[#allocation2 + $0x1a0] sm:$0xff]  ;;  %v403_v9 = vld [vmem:[#allocation2 + $0x1a8] sm:$0xff] }
  0x42   : > { %1005 = vmatpush.msra.mxu2 %v417_v24  ;;  %458 = vmatpush.msra.mxu0 %v417_v24  ;;  %v370_v10 = vld [vmem:[#allocation2 + $0xa0] sm:$0xff]  ;;  %v371_v11 = vld [vmem:[#allocation2 + $0xa8] sm:$0xff]  ;;  %v404_v12 = vld [vmem:[#allocation2 + $0x1b0] sm:$0xff] }
  0x43   : > { %1021 = vmatpush.msra.mxu3 %v433_v25  ;;  %571 = vmatpush.msra.mxu1 %v433_v25  ;;  %v405_v13 = vld [vmem:[#allocation2 + $0x1b8] sm:$0xff]  ;;  %v372_v14 = vld [vmem:[#allocation2 + $0xb0] sm:$0xff]  ;;  %v406_v16 = vld [vmem:[#allocation2 + $0x1c0] sm:$0xff] }
  0x44   : > { %1006 = vmatpush.msra.mxu2 %v416_v26  ;;  %459 = vmatpush.msra.mxu0 %v416_v26  ;;  %v373_v15 = vld [vmem:[#allocation2 + $0xb8] sm:$0xff]  ;;  %v407_v17 = vld [vmem:[#allocation2 + $0x1c8] sm:$0xff]  ;;  %v374_v18 = vld [vmem:[#allocation2 + $0xc0] sm:$0xff] }
  0x45   : > { %1022 = vmatpush.msra.mxu3 %v432_v27  ;;  %572 = vmatpush.msra.mxu1 %v432_v27  ;;  %v375_v19 = vld [vmem:[#allocation2 + $0xc8] sm:$0xff]  ;;  %v408_v20 = vld [vmem:[#allocation2 + $0x1d0] sm:$0xff]  ;;  %v409_v21 = vld [vmem:[#allocation2 + $0x1d8] sm:$0xff] }
  0x46   : > { %1007 = vmatpush.msra.mxu2 %v415_v28  ;;  %460 = vmatpush.msra.mxu0 %v415_v28  ;;  %v376_v22 = vld [vmem:[#allocation2 + $0xd0] sm:$0xff]  ;;  %v377_v23 = vld [vmem:[#allocation2 + $0xd8] sm:$0xff]  ;;  %v410_v24 = vld [vmem:[#allocation2 + $0x1e0] sm:$0xff] }
  0x47   : > { %1023 = vmatpush.msra.mxu3 %v431_v29  ;;  %573 = vmatpush.msra.mxu1 %v431_v29  ;;  %v411_v25 = vld [vmem:[#allocation2 + $0x1e8] sm:$0xff]  ;;  %v378_v26 = vld [vmem:[#allocation2 + $0xe0] sm:$0xff]  ;;  %v412_v28 = vld [vmem:[#allocation2 + $0x1f0] sm:$0xff] }
  0x48   : > { %1008 = vmatpush.msra.mxu2 %v414_v30  ;;  %461 = vmatpush.msra.mxu0 %v414_v30  ;;  %v379_v27 = vld [vmem:[#allocation2 + $0xe8] sm:$0xff]  ;;  %v413_v29 = vld [vmem:[#allocation2 + $0x1f8] sm:$0xff]  ;;  %v380_v30 = vld [vmem:[#allocation2 + $0xf0] sm:$0xff] }
  0x49   : > { %1024 = vmatpush.msra.mxu3 %v430_v31  ;;  %510 = vmatmul.f32.vlgmr.msra.gmra.mxu2 %v382_v32 }
  0x4a   : > { %623 = vmatmul.f32.vlgmr.msra.gmra.mxu3 %v383_v33  ;;  %574 = vmatpush.msra.mxu1 %v430_v31  ;;  %v381_v31 = vld [vmem:[#allocation2 + $0xf8] sm:$0xff] }
  0x4b   : > { %462 = vmatmul.f32.vlgmr.msra.gmra.mxu0 %v350_v34  ;;  %575 = vmatmul.f32.vlgmr.msra.gmra.mxu1 %v351_v35  ;;  %v1494_v35 = vld [vmem:[%s250_s11] ss:$0 sm:$0xff] }
  0x51   : > { %513 = vmatmul.f32.gmra.mxu2 %v384_v36 }
  0x52   : > { %626 = vmatmul.f32.gmra.mxu3 %v385_v37 }
  0x53   : > { %465 = vmatmul.f32.gmra.mxu0 %v352_v38  ;;  %578 = vmatmul.f32.gmra.mxu1 %v353_v39 }
  0x59   : > { %516 = vmatmul.f32.gmra.mxu2 %v386_v40 }
  0x5a   : > { %629 = vmatmul.f32.gmra.mxu3 %v387_v41 }
  0x5b   : > { %468 = vmatmul.f32.gmra.mxu0 %v354_v42  ;;  %581 = vmatmul.f32.gmra.mxu1 %v355_v43 }
  0x61   : > { %519 = vmatmul.f32.gmra.mxu2 %v388_v44 }
  0x62   : > { %632 = vmatmul.f32.gmra.mxu3 %v389_v45 }
  0x63   : > { %471 = vmatmul.f32.gmra.mxu0 %v356_v46  ;;  %584 = vmatmul.f32.gmra.mxu1 %v357_v47 }
  0x69   : > { %522 = vmatmul.f32.gmra.mxu2 %v390_v48 }
  0x6a   : > { %635 = vmatmul.f32.gmra.mxu3 %v391_v49 }
  0x6b   : > { %474 = vmatmul.f32.gmra.mxu0 %v358_v50  ;;  %587 = vmatmul.f32.gmra.mxu1 %v359_v51 }
  0x71   : > { %525 = vmatmul.f32.gmra.mxu2 %v392_v52 }
  0x72   : > { %638 = vmatmul.f32.gmra.mxu3 %v393_v53 }
  0x73   : > { %477 = vmatmul.f32.gmra.mxu0 %v360_v54  ;;  %590 = vmatmul.f32.gmra.mxu1 %v361_v55 }
  0x79   : > { %528 = vmatmul.f32.gmra.mxu2 %v394_v56 }
  0x7a   : > { %641 = vmatmul.f32.gmra.mxu3 %v395_v57 }
  0x7b   : > { %480 = vmatmul.f32.gmra.mxu0 %v362_v58  ;;  %593 = vmatmul.f32.gmra.mxu1 %v363_v59 }
  0x81   : > { %531 = vmatmul.f32.gmra.mxu2 %v396_v60 }
  0x82   : > { %644 = vmatmul.f32.gmra.mxu3 %v397_v61 }
  0x83   : > { %483 = vmatmul.f32.gmra.mxu0 %v364_v62  ;;  %596 = vmatmul.f32.gmra.mxu1 %v365_v63 }
  0x89   : > { %534 = vmatmul.f32.gmra.mxu2 %v398_v0 }
  0x8a   : > { %647 = vmatmul.f32.gmra.mxu3 %v399_v1 }
  0x8b   : > { %486 = vmatmul.f32.gmra.mxu0 %v366_v2  ;;  %599 = vmatmul.f32.gmra.mxu1 %v367_v3 }
  0x91   : > { %537 = vmatmul.f32.gmra.mxu2 %v400_v4 }
  0x92   : > { %650 = vmatmul.f32.gmra.mxu3 %v401_v5 }
  0x93   : > { %489 = vmatmul.f32.gmra.mxu0 %v368_v6  ;;  %602 = vmatmul.f32.gmra.mxu1 %v369_v7 }
  0x99   : > { %540 = vmatmul.f32.gmra.mxu2 %v402_v8 }
  0x9a   : > { %653 = vmatmul.f32.gmra.mxu3 %v403_v9 }
  0x9b   : > { %492 = vmatmul.f32.gmra.mxu0 %v370_v10  ;;  %605 = vmatmul.f32.gmra.mxu1 %v371_v11 }
  0xa1   : > { %543 = vmatmul.f32.gmra.mxu2 %v404_v12 }
  0xa2   : > { %656 = vmatmul.f32.gmra.mxu3 %v405_v13 }
  0xa3   : > { %495 = vmatmul.f32.gmra.mxu0 %v372_v14  ;;  %608 = vmatmul.f32.gmra.mxu1 %v373_v15 }
  0xa9   : > { %546 = vmatmul.f32.gmra.mxu2 %v406_v16 }
  0xaa   : > { %659 = vmatmul.f32.gmra.mxu3 %v407_v17 }
  0xab   : > { %498 = vmatmul.f32.gmra.mxu0 %v374_v18  ;;  %611 = vmatmul.f32.gmra.mxu1 %v375_v19 }
  0xb1   : > { %549 = vmatmul.f32.gmra.mxu2 %v408_v20 }
  0xb2   : > { %662 = vmatmul.f32.gmra.mxu3 %v409_v21 }
  0xb3   : > { %501 = vmatmul.f32.gmra.mxu0 %v376_v22  ;;  %614 = vmatmul.f32.gmra.mxu1 %v377_v23 }
  0xb9   : > { %552 = vmatmul.f32.gmra.mxu2 %v410_v24 }
  0xba   : > { %665 = vmatmul.f32.gmra.mxu3 %v411_v25 }
  0xbb   : > { %504 = vmatmul.f32.gmra.mxu0 %v378_v26  ;;  %617 = vmatmul.f32.gmra.mxu1 %v379_v27 }
  0xc1   : > { %555 = vmatmul.f32.gmra.mxu2 %v412_v28 }
  0xc2   : > { %668 = vmatmul.f32.gmra.mxu3 %v413_v29 }
  0xc3   : > { %507 = vmatmul.f32.gmra.mxu0 %v380_v30  ;;  %620 = vmatmul.f32.gmra.mxu1 %v381_v31 }
  0xc8   : > { %v463_v32 = vpop.f32.mrf.mxu0  ;;  %v576_v33 = vpop.f32.mrf.mxu1 }
  0xc9   : > { %v577_v34 = vadd.f32 %v576_v33, %v463_v32 }
  0xcb   : > { %v775_v38 = vadd.f32 %v1494_v35, %v577_v34 }
  0xcc   : > { %v511_v36 = vpop.f32.mrf.mxu2 }
  0xcd   : > { %v624_v37 = vpop.f32.mrf.mxu3  ;;  %807 = vst [vmem:[%s1499_s20] sm:$0xff] %v775_v38 }
  0xce   : > { %v625_v39 = vadd.f32 %v624_v37, %v511_v36 }
  0xd0   : > { %v466_v40 = vpop.f32.mrf.mxu0  ;;  %v579_v41 = vpop.f32.mrf.mxu1  ;;  %v791_v42 = vadd.f32 %v1494_v35, %v625_v39 }
  0xd1   : > { %v580_v43 = vadd.f32 %v579_v41, %v466_v40 }
  0xd2   : > { %823 = vst [vmem:[%s1499_s20 + $0x80] sm:$0xff] %v791_v42 }
  0xd3   : > { %v776_v46 = vadd.f32 %v1494_v35, %v580_v43 }
  0xd4   : > { %v514_v44 = vpop.f32.mrf.mxu2 }
  0xd5   : > { %v627_v45 = vpop.f32.mrf.mxu3  ;;  %808 = vst [vmem:[%s1499_s20 + $0x8] sm:$0xff] %v776_v46 }
  0xd6   : > { %v628_v47 = vadd.f32 %v627_v45, %v514_v44 }
  0xd8   : > { %v469_v48 = vpop.f32.mrf.mxu0  ;;  %v582_v49 = vpop.f32.mrf.mxu1  ;;  %v792_v50 = vadd.f32 %v1494_v35, %v628_v47 }
  0xd9   : > { %v583_v51 = vadd.f32 %v582_v49, %v469_v48 }
  0xda   : > { %824 = vst [vmem:[%s1499_s20 + $0x88] sm:$0xff] %v792_v50 }
  0xdb   : > { %v777_v54 = vadd.f32 %v1494_v35, %v583_v51 }
  0xdc   : > { %v517_v52 = vpop.f32.mrf.mxu2 }
  0xdd   : > { %v630_v53 = vpop.f32.mrf.mxu3  ;;  %809 = vst [vmem:[%s1499_s20 + $0x10] sm:$0xff] %v777_v54 }
  0xde   : > { %v631_v55 = vadd.f32 %v630_v53, %v517_v52 }
  0xe0   : > { %v472_v56 = vpop.f32.mrf.mxu0  ;;  %v585_v57 = vpop.f32.mrf.mxu1  ;;  %v793_v58 = vadd.f32 %v1494_v35, %v631_v55 }
  0xe1   : > { %v586_v59 = vadd.f32 %v585_v57, %v472_v56 }
  0xe2   : > { %825 = vst [vmem:[%s1499_s20 + $0x90] sm:$0xff] %v793_v58 }
  0xe3   : > { %v778_v62 = vadd.f32 %v1494_v35, %v586_v59 }
  0xe4   : > { %v520_v60 = vpop.f32.mrf.mxu2 }
  0xe5   : > { %v633_v61 = vpop.f32.mrf.mxu3  ;;  %810 = vst [vmem:[%s1499_s20 + $0x18] sm:$0xff] %v778_v62 }
  0xe6   : > { %v634_v63 = vadd.f32 %v633_v61, %v520_v60 }
  0xe8   : > { %v475_v0 = vpop.f32.mrf.mxu0  ;;  %v588_v1 = vpop.f32.mrf.mxu1  ;;  %v794_v2 = vadd.f32 %v1494_v35, %v634_v63 }
  0xe9   : > { %v589_v3 = vadd.f32 %v588_v1, %v475_v0 }
  0xea   : > { %826 = vst [vmem:[%s1499_s20 + $0x98] sm:$0xff] %v794_v2 }
  0xeb   : > { %v779_v6 = vadd.f32 %v1494_v35, %v589_v3 }
  0xec   : > { %v523_v4 = vpop.f32.mrf.mxu2 }
  0xed   : > { %v636_v5 = vpop.f32.mrf.mxu3  ;;  %811 = vst [vmem:[%s1499_s20 + $0x20] sm:$0xff] %v779_v6 }
  0xee   : > { %v637_v7 = vadd.f32 %v636_v5, %v523_v4 }
  0xf0   : > { %v478_v8 = vpop.f32.mrf.mxu0  ;;  %v591_v9 = vpop.f32.mrf.mxu1  ;;  %v795_v10 = vadd.f32 %v1494_v35, %v637_v7 }
  0xf1   : > { %v592_v11 = vadd.f32 %v591_v9, %v478_v8 }
  0xf2   : > { %827 = vst [vmem:[%s1499_s20 + $0xa0] sm:$0xff] %v795_v10 }
  0xf3   : > { %v780_v14 = vadd.f32 %v1494_v35, %v592_v11 }
  0xf4   : > { %v526_v12 = vpop.f32.mrf.mxu2 }
  0xf5   : > { %v639_v13 = vpop.f32.mrf.mxu3  ;;  %812 = vst [vmem:[%s1499_s20 + $0x28] sm:$0xff] %v780_v14 }
  0xf6   : > { %v640_v15 = vadd.f32 %v639_v13, %v526_v12 }
  0xf8   : > { %v481_v16 = vpop.f32.mrf.mxu0  ;;  %v594_v17 = vpop.f32.mrf.mxu1  ;;  %v796_v18 = vadd.f32 %v1494_v35, %v640_v15 }
  0xf9   : > { %v595_v19 = vadd.f32 %v594_v17, %v481_v16 }
  0xfa   : > { %828 = vst [vmem:[%s1499_s20 + $0xa8] sm:$0xff] %v796_v18 }
  0xfb   : > { %v781_v22 = vadd.f32 %v1494_v35, %v595_v19 }
  0xfc   : > { %v529_v20 = vpop.f32.mrf.mxu2 }
  0xfd   : > { %v642_v21 = vpop.f32.mrf.mxu3  ;;  %813 = vst [vmem:[%s1499_s20 + $0x30] sm:$0xff] %v781_v22 }
  0xfe   : > { %v643_v23 = vadd.f32 %v642_v21, %v529_v20 }
 0x100   : > { %v484_v24 = vpop.f32.mrf.mxu0  ;;  %v597_v25 = vpop.f32.mrf.mxu1  ;;  %v797_v26 = vadd.f32 %v1494_v35, %v643_v23 }
 0x101   : > { %v598_v27 = vadd.f32 %v597_v25, %v484_v24 }
 0x102   : > { %829 = vst [vmem:[%s1499_s20 + $0xb0] sm:$0xff] %v797_v26 }
 0x103   : > { %v782_v30 = vadd.f32 %v1494_v35, %v598_v27 }
 0x104   : > { %v532_v28 = vpop.f32.mrf.mxu2 }
 0x105   : > { %v645_v29 = vpop.f32.mrf.mxu3  ;;  %814 = vst [vmem:[%s1499_s20 + $0x38] sm:$0xff] %v782_v30 }
 0x106   : > { %v646_v31 = vadd.f32 %v645_v29, %v532_v28 }
 0x108   : > { %v487_v32 = vpop.f32.mrf.mxu0  ;;  %v600_v33 = vpop.f32.mrf.mxu1  ;;  %v798_v34 = vadd.f32 %v1494_v35, %v646_v31 }
 0x109   : > { %v601_v36 = vadd.f32 %v600_v33, %v487_v32 }
 0x10a   : > { %830 = vst [vmem:[%s1499_s20 + $0xb8] sm:$0xff] %v798_v34 }
 0x10b   : > { %v783_v39 = vadd.f32 %v1494_v35, %v601_v36 }
 0x10c   : > { %v535_v37 = vpop.f32.mrf.mxu2 }
 0x10d   : > { %v648_v38 = vpop.f32.mrf.mxu3  ;;  %815 = vst [vmem:[%s1499_s20 + $0x40] sm:$0xff] %v783_v39 }
 0x10e   : > { %v649_v40 = vadd.f32 %v648_v38, %v535_v37 }
 0x110   : > { %v490_v41 = vpop.f32.mrf.mxu0  ;;  %v603_v42 = vpop.f32.mrf.mxu1  ;;  %v799_v43 = vadd.f32 %v1494_v35, %v649_v40 }
 0x111   : > { %v604_v44 = vadd.f32 %v603_v42, %v490_v41 }
 0x112   : > { %831 = vst [vmem:[%s1499_s20 + $0xc0] sm:$0xff] %v799_v43 }
 0x113   : > { %v784_v47 = vadd.f32 %v1494_v35, %v604_v44 }
 0x114   : > { %v538_v45 = vpop.f32.mrf.mxu2 }
 0x115   : > { %v651_v46 = vpop.f32.mrf.mxu3  ;;  %816 = vst [vmem:[%s1499_s20 + $0x48] sm:$0xff] %v784_v47 }
 0x116   : > { %v652_v48 = vadd.f32 %v651_v46, %v538_v45 }
 0x118   : > { %v493_v49 = vpop.f32.mrf.mxu0  ;;  %v606_v50 = vpop.f32.mrf.mxu1  ;;  %v800_v51 = vadd.f32 %v1494_v35, %v652_v48 }
 0x119   : > { %v607_v52 = vadd.f32 %v606_v50, %v493_v49 }
 0x11a   : > { %832 = vst [vmem:[%s1499_s20 + $0xc8] sm:$0xff] %v800_v51 }
 0x11b   : > { %v785_v55 = vadd.f32 %v1494_v35, %v607_v52 }
 0x11c   : > { %v541_v53 = vpop.f32.mrf.mxu2 }
 0x11d   : > { %v654_v54 = vpop.f32.mrf.mxu3  ;;  %817 = vst [vmem:[%s1499_s20 + $0x50] sm:$0xff] %v785_v55 }
 0x11e   : > { %v655_v56 = vadd.f32 %v654_v54, %v541_v53 }
 0x120   : > { %v496_v57 = vpop.f32.mrf.mxu0  ;;  %v609_v58 = vpop.f32.mrf.mxu1  ;;  %v801_v59 = vadd.f32 %v1494_v35, %v655_v56 }
 0x121   : > { %v610_v60 = vadd.f32 %v609_v58, %v496_v57 }
 0x122   : > { %833 = vst [vmem:[%s1499_s20 + $0xd0] sm:$0xff] %v801_v59 }
 0x123   : > { %v786_v63 = vadd.f32 %v1494_v35, %v610_v60 }
 0x124   : > { %v544_v61 = vpop.f32.mrf.mxu2 }
 0x125   : > { %v657_v62 = vpop.f32.mrf.mxu3  ;;  %818 = vst [vmem:[%s1499_s20 + $0x58] sm:$0xff] %v786_v63 }
 0x126   : > { %v658_v0 = vadd.f32 %v657_v62, %v544_v61 }
 0x128   : > { %v499_v1 = vpop.f32.mrf.mxu0  ;;  %v612_v2 = vpop.f32.mrf.mxu1  ;;  %v802_v3 = vadd.f32 %v1494_v35, %v658_v0 }
 0x129   : > { %v613_v4 = vadd.f32 %v612_v2, %v499_v1 }
 0x12a   : > { %834 = vst [vmem:[%s1499_s20 + $0xd8] sm:$0xff] %v802_v3 }
 0x12b   : > { %v787_v7 = vadd.f32 %v1494_v35, %v613_v4 }
 0x12c   : > { %v547_v5 = vpop.f32.mrf.mxu2 }
 0x12d   : > { %v660_v6 = vpop.f32.mrf.mxu3  ;;  %819 = vst [vmem:[%s1499_s20 + $0x60] sm:$0xff] %v787_v7 }
 0x12e   : > { %v661_v8 = vadd.f32 %v660_v6, %v547_v5 }
 0x130   : > { %v502_v9 = vpop.f32.mrf.mxu0  ;;  %v615_v10 = vpop.f32.mrf.mxu1  ;;  %v803_v11 = vadd.f32 %v1494_v35, %v661_v8 }
 0x131   : > { %v616_v12 = vadd.f32 %v615_v10, %v502_v9 }
 0x132   : > { %835 = vst [vmem:[%s1499_s20 + $0xe0] sm:$0xff] %v803_v11 }
 0x133   : > { %v788_v15 = vadd.f32 %v1494_v35, %v616_v12 }
 0x134   : > { %v550_v13 = vpop.f32.mrf.mxu2 }
 0x135   : > { %v663_v14 = vpop.f32.mrf.mxu3  ;;  %820 = vst [vmem:[%s1499_s20 + $0x68] sm:$0xff] %v788_v15 }
 0x136   : > { %v664_v16 = vadd.f32 %v663_v14, %v550_v13 }
 0x138   : > { %v505_v17 = vpop.f32.mrf.mxu0  ;;  %v618_v18 = vpop.f32.mrf.mxu1  ;;  %v804_v19 = vadd.f32 %v1494_v35, %v664_v16 }
 0x139   : > { %v619_v20 = vadd.f32 %v618_v18, %v505_v17 }
 0x13a   : > { %836 = vst [vmem:[%s1499_s20 + $0xe8] sm:$0xff] %v804_v19 }
 0x13b   : > { %v789_v23 = vadd.f32 %v1494_v35, %v619_v20 }
 0x13c   : > { %v553_v21 = vpop.f32.mrf.mxu2 }
 0x13d   : > { %v666_v22 = vpop.f32.mrf.mxu3  ;;  %821 = vst [vmem:[%s1499_s20 + $0x70] sm:$0xff] %v789_v23 }
 0x13e   : > { %v667_v24 = vadd.f32 %v666_v22, %v553_v21 }
 0x140   : > { %v508_v25 = vpop.f32.mrf.mxu0  ;;  %v621_v26 = vpop.f32.mrf.mxu1  ;;  %v805_v27 = vadd.f32 %v1494_v35, %v667_v24 }
 0x141   : > { %v622_v28 = vadd.f32 %v621_v26, %v508_v25 }
 0x142   : > { %837 = vst [vmem:[%s1499_s20 + $0xf0] sm:$0xff] %v805_v27 }
 0x143   : > { %v790_v31 = vadd.f32 %v1494_v35, %v622_v28 }
 0x144   : > { %v556_v29 = vpop.f32.mrf.mxu2 }
 0x145   : > { %v669_v30 = vpop.f32.mrf.mxu3  ;;  %822 = vst [vmem:[%s1499_s20 + $0x78] sm:$0xff] %v790_v31 }
 0x146   : > { %v670_v32 = vadd.f32 %v669_v30, %v556_v29 }
 0x148   : > { %v806_v33 = vadd.f32 %v1494_v35, %v670_v32 }
 0x14a   : > { %838 = vst [vmem:[%s1499_s20 + $0xf8] sm:$0xff] %v806_v33 }
 0x14b   : > { %1229 = shalt.err (!%p1226_p13)
}
 0x14c   : > { %s1295_s29 = smov 128   ;;  %s1296_s7 = smov 256  }
 0x14d   : > { %s1297_s11 = smov 8  }
 0x14e   : > { %1033 = dma.vmem_to_hbm [thread:$0]  (%p1409_p0), %s855_s5, 4096, %s857_s15, %s840_s9, %s1295_s29, %s1296_s7, %s1297_s11  }
 0x14f PF: > { %s871_s20 = sand.u32 1, %s1268_s12   ;;  %p1047_p3 = pnand %p982_p4, %p1413_p2 }
 0x150   : > { %s872_s27 = scalar_lea.sflag [#allocation4], %s871_s20 }
 0x151   : > { %p1048_p5 = pneg %p1047_p3 }
 0x153   : > { %1263 = dma.done.wait (%p1048_p5), %s872_s27, 4096  }
 0x154   : > { %1265 = vsyncadd (%p1048_p5), %s872_s27, 4294963200  ;;  %s20_s17 = sadd.s32 1, %s1288_s17   ;;  %s1613_s12 = smov %s1272_s13 }
 0x155   : > { %p17_p1 = scmp.ge.s32.totalorder %s20_s17, 4   ;;  %s1614_s13 = smov %s1276_s14 }
 0x156   : > { %s1615_s14 = smov %s1369_s24  ;;  %s1616_s15 = smov %s1284_s16 }
 0x157   : > { %s1617_s16 = smov %s1619_s18  ;;  %19 = sbr.rel (!%p17_p1) target bundleno = 7 (0x7), region = 102 }
 0x15c   :  { %878 = vsyncpa [#allocation3], 1 }
 0x15d   :  { %880 = vsyncpa [#allocation3 + $0x1], 1 }
 0x15e   :  { %881 = vsyncpa [#allocation6], 1 }
 0x15f   :  { %883 = vsyncpa [#allocation6 + $0x1], 1 }
 0x160   :  { %884 = vsyncpa [#allocation4], 1 }
 0x161   :  { %886 = vsyncpa [#allocation4 + $0x1], 1 }

</bundles_post_ra>
